<compile_context>
chip_gen: v7x
topology: tpu7x:2x2x1
jax: 0.10.0
libtpu: 0.0.40
codegen_flags: <defaults>
</compile_context>

<pallas_src>
import jax
import jax.numpy as jnp
import numpy as np
from jax import lax
from jax.experimental import pallas as pl
from jax.experimental.pallas import tpu as pltpu


# ------------------------------ small helpers -------------------------------

def _round_up(x, m):
    return ((x + m - 1) // m) * m


def _pick_tile(total, candidates):
    for t in candidates:
        if total % t == 0:
            return t
    return total


def _cparams(dims):
    return pltpu.CompilerParams(
        dimension_semantics=dims,
        vmem_limit_bytes=32 * 1024 * 1024,
    )


# ----------------------------- Pallas kernels ------------------------------

def _maxpool_kernel(ev_ref, od_ref, o_ref):
    # MaxPool1d(kernel_size=3, stride=2, padding=1).
    # Layout: sublanes = output positions, lanes = fused N*C (lane-dense).
    #   ev_ref[j] = padded position 2j   (even taps, one extra trailing row)
    #   od_ref[j] = padded position 2j+1 (odd taps)
    # window j -> max(ev[j], od[j], ev[j+1]); padding rows carry -inf.
    lq = o_ref.shape[0]
    t0 = ev_ref[pl.ds(0, lq), :]
    t2 = ev_ref[pl.ds(1, lq), :]
    o_ref[...] = jnp.maximum(jnp.maximum(t0, od_ref[...]), t2)


def _conv_stats_kernel(taps_ref, w_ref, y_ref, sum_ref, ssq_ref):
    # Conv1d(C, C, k=3, s=2, p=1) as a single fused K=3C MXU matmul
    # (bf16 inputs, f32 accumulation), plus per-channel sum / sum-of-squares
    # accumulated across the NL ("arbitrary") grid axis for BatchNorm stats.
    # The conv bias is omitted on purpose: BatchNorm subtracts the batch mean
    # immediately after, so a per-channel additive bias cancels exactly.
    @pl.when(pl.program_id(1) == 0)
    def _():
        sum_ref[...] = jnp.zeros_like(sum_ref)
        ssq_ref[...] = jnp.zeros_like(ssq_ref)

    y = jnp.dot(w_ref[...], taps_ref[...], preferred_element_type=jnp.float32)
    y_ref[...] = y
    sum_ref[...] += jnp.sum(y, axis=1, keepdims=True)
    ssq_ref[...] += jnp.sum(y * y, axis=1, keepdims=True)


def _bn_apply_kernel(y_ref, scale_ref, shift_ref, o_ref):
    # BatchNorm1d training-mode normalization with gamma folded into the
    # per-channel scale and (beta - mean*scale) folded into the shift.
    o_ref[...] = y_ref[...] * scale_ref[...] + shift_ref[...]


# ------------------------------ JAX wrappers --------------------------------

def maxpool1d_k3s2p1(x):
    n, c, l = x.shape
    l_out = (l + 1) // 2
    nc = n * c
    ncp = _round_up(nc, 128)

    xf = x.astype(jnp.float32)
    # (N, C, L) -> (L, N*C): lanes hold the fused batch*channel axis.
    xt = jnp.transpose(xf, (2, 0, 1)).reshape(l, nc)
    neg = jnp.float32(-jnp.inf)
    # Even taps: padded positions 0, 2, ..., 2*l_out   -> l_out + 1 rows.
    ev = jnp.full((l_out + 1, ncp), neg, jnp.float32)
    ev = ev.at[1:1 + l // 2, :nc].set(xt[1::2])
    # Odd taps: padded positions 1, 3, ..., 2*l_out-1  -> l_out rows.
    od = jnp.full((l_out, ncp), neg, jnp.float32)
    od = od.at[:, :nc].set(xt[0::2][:l_out])

    lane_tile = _pick_tile(ncp, (2048, 1024, 512, 256, 128))
    out = pl.pallas_call(
        _maxpool_kernel,
        out_shape=jax.ShapeDtypeStruct((l_out, ncp), jnp.float32),
        grid=(ncp // lane_tile,),
        in_specs=[
            pl.BlockSpec((l_out + 1, lane_tile), lambda i: (0, i)),
            pl.BlockSpec((l_out, lane_tile), lambda i: (0, i)),
        ],
        out_specs=pl.BlockSpec((l_out, lane_tile), lambda i: (0, i)),
        compiler_params=_cparams(("parallel",)),
    )(ev, od)

    # TODO(synk): when chained inside VDCNN, keep this lane-dense (L_out, N*C)
    # layout between blocks instead of transposing back to NCL each time.
    out = out[:, :nc].reshape(l_out, n, c).transpose(1, 2, 0)
    return out.astype(x.dtype)


def conv_bn_downsample(x, weight, bias, gamma, beta, eps=1e-5):
    del bias  # mathematically cancelled by the BatchNorm mean subtraction.
    n, c, l = x.shape
    l_out = (l + 1) // 2
    nl = n * l_out
    nlp = _round_up(nl, 128)
    lp = 2 * l_out + 2

    # im2col for the fused K=3C matmul: taps[k*C + ci, n*L_out + p]
    #   = x_padded[n, ci, 2p + k]; zero padding -> padded NL columns give y=0,
    # so they contribute nothing to the BN sums (we divide by the true NL).
    xf = x.astype(jnp.float32)
    x_pad = jnp.zeros((n, c, lp), jnp.float32).at[:, :, 1:1 + l].set(xf)
    taps = jnp.stack([x_pad[:, :, k:k + 2 * l_out:2] for k in range(3)], axis=0)
    taps = jnp.transpose(taps, (0, 2, 1, 3)).reshape(3 * c, nl)      # (3C, NL)
    taps_p = jnp.zeros((3 * c, nlp), jnp.bfloat16)
    taps_p = taps_p.at[:, :nl].set(taps.astype(jnp.bfloat16))

    # weight (C_out, C_in, 3) -> (C_out, 3*C_in) matching the taps layout.
    w = jnp.transpose(weight, (0, 2, 1)).reshape(c, 3 * c).astype(jnp.bfloat16)

    c_tile = _pick_tile(c, (256, 128, 64, 32, 16, 8))
    nl_tile = _pick_tile(nlp, (1024, 512, 256, 128))
    grid = (c // c_tile, nlp // nl_tile)

    # Pass 1: conv matmul tiles + cross-tile per-channel sum / sum-of-squares.
    y, s1, s2 = pl.pallas_call(
        _conv_stats_kernel,
        out_shape=(
            jax.ShapeDtypeStruct((c, nlp), jnp.float32),   # conv output
            jax.ShapeDtypeStruct((c, 1), jnp.float32),     # per-channel sum
            jax.ShapeDtypeStruct((c, 1), jnp.float32),     # per-channel sumsq
        ),
        grid=grid,
        in_specs=[
            pl.BlockSpec((3 * c, nl_tile), lambda ci, li: (0, li)),
            pl.BlockSpec((c_tile, 3 * c), lambda ci, li: (ci, 0)),
        ],
        out_specs=(
            pl.BlockSpec((c_tile, nl_tile), lambda ci, li: (ci, li)),
            pl.BlockSpec((c_tile, 1), lambda ci, li: (ci, 0)),
            pl.BlockSpec((c_tile, 1), lambda ci, li: (ci, 0)),
        ),
        compiler_params=_cparams(("parallel", "arbitrary")),
    )(taps_p, w)

    # Tiny (C, 1) statistics math (biased variance, training-mode BN) in JAX.
    mean = s1 / nl
    var = s2 / nl - mean * mean
    scale = gamma.reshape(c, 1).astype(jnp.float32) * lax.rsqrt(var + eps)
    shift = beta.reshape(c, 1).astype(jnp.float32) - mean * scale

    # Pass 2: apply the normalization, fully parallel over both tile axes.
    out = pl.pallas_call(
        _bn_apply_kernel,
        out_shape=jax.ShapeDtypeStruct((c, nlp), jnp.float32),
        grid=grid,
        in_specs=[
            pl.BlockSpec((c_tile, nl_tile), lambda ci, li: (ci, li)),
            pl.BlockSpec((c_tile, 1), lambda ci, li: (ci, 0)),
            pl.BlockSpec((c_tile, 1), lambda ci, li: (ci, 0)),
        ],
        out_specs=pl.BlockSpec((c_tile, nl_tile), lambda ci, li: (ci, li)),
        compiler_params=_cparams(("parallel", "parallel")),
    )(y, scale, shift)

    # TODO(synk): keep the lane-dense (C, N*L_out) layout between chained
    # VDCNN blocks instead of transposing back to NCL here.
    return out[:, :nl].reshape(c, n, l_out).transpose(1, 0, 2)


def downsample_block(x, pool_type="max", params=None):
    """Pallas port of DownSampleBlock.forward."""
    if pool_type == "max":
        return maxpool1d_k3s2p1(x)
    elif pool_type == "conv":
        return conv_bn_downsample(
            x, params["weight"], params["bias"], params["gamma"], params["beta"]
        )
    elif pool_type is None:
        return x
    else:
        raise ValueError("unsupported pooling type , must be ['max', 'conv', None] !")


# ------------------------------- references --------------------------------

def _ref_maxpool(x):
    return lax.reduce_window(
        x, -jnp.inf, lax.max,
        window_dimensions=(1, 1, 3), window_strides=(1, 1, 2),
        padding=((0, 0), (0, 0), (1, 1)),
    )


def _ref_conv_bn(x, weight, bias, gamma, beta):
    y = lax.conv_general_dilated(
        x, weight, window_strides=(2,), padding=((1, 1),),
        dimension_numbers=("NCH", "OIH", "NCH"),
    ) + bias[None, :, None]
    mean = jnp.mean(y, axis=(0, 2), keepdims=True)
    var = jnp.var(y, axis=(0, 2), keepdims=True)      # biased, as in BN training fwd
    return (y - mean) / jnp.sqrt(var + 1e-5) * gamma[None, :, None] + beta[None, :, None]


# ---------------------------------- main ------------------------------------

if __name__ == "__main__":
    key = jax.random.PRNGKey(0)
    k_x, k_w, k_b, k_g, k_be = jax.random.split(key, 5)

    N, C, L = 2, 8, 16                    # small NCL input, L_out = 8
    x = jax.random.normal(k_x, (N, C, L), dtype=jnp.float32)

    # Deterministic synthetic parameters (Conv1d(C, C, 3) + BatchNorm1d(C)).
    params = {
        "weight": 0.1 * jax.random.normal(k_w, (C, C, 3), dtype=jnp.float32),
        "bias": 0.1 * jax.random.normal(k_b, (C,), dtype=jnp.float32),
        "gamma": 1.0 + 0.1 * jax.random.normal(k_g, (C,), dtype=jnp.float32),
        "beta": 0.1 * jax.random.normal(k_be, (C,), dtype=jnp.float32),
    }

    # pool_type='max'  (pure f32 elementwise max -> exact)
    out_max = jax.block_until_ready(downsample_block(x, "max"))
    ref_max = _ref_maxpool(x)
    np.testing.assert_allclose(np.asarray(out_max), np.asarray(ref_max),
                               rtol=1e-6, atol=1e-6)

    # pool_type='conv'
    out_conv = jax.block_until_ready(downsample_block(x, "conv", params))
    # (a) tight check vs a reference with the same bf16 input rounding
    xb = x.astype(jnp.bfloat16).astype(jnp.float32)
    wb = params["weight"].astype(jnp.bfloat16).astype(jnp.float32)
    ref_matched = _ref_conv_bn(xb, wb, params["bias"], params["gamma"], params["beta"])
    np.testing.assert_allclose(np.asarray(out_conv), np.asarray(ref_matched),
                               rtol=1e-4, atol=1e-4)
    # (b) loose check vs pure-f32 module semantics (bf16 MXU inputs introduce
    #     ~1e-3..1e-2 absolute error after BN normalization).
    ref_f32 = _ref_conv_bn(x, params["weight"], params["bias"],
                           params["gamma"], params["beta"])
    np.testing.assert_allclose(np.asarray(out_conv), np.asarray(ref_f32),
                               rtol=6e-2, atol=6e-2)

    # pool_type=None (identity)
    out_id = jax.block_until_ready(downsample_block(x, None))
    np.testing.assert_allclose(np.asarray(out_id), np.asarray(x))

    print("KERNEL_OK")
</pallas_src>

<mosaic_0001>
module attributes {stable_mosaic.version = 11 : i64} {
  func.func @_maxpool_kernel(%arg0: i32, %arg1: memref<9x128xf32, #tpu.memory_space<vmem>>, %arg2: memref<8x128xf32, #tpu.memory_space<vmem>>, %arg3: memref<8x128xf32, #tpu.memory_space<vmem>>) attributes {dimension_semantics = [#tpu.dimension_semantics<parallel>], iteration_bounds = array<i64: 1>, scalar_prefetch = 0 : i64, scratch_operands = 0 : i64, tpu.core_type = #tpu.core_type<tc>, window_params = [{transform_indices = @transform_0, window_bounds = array<i64: 9, 128>}, {transform_indices = @transform_1, window_bounds = array<i64: 8, 128>}, {transform_indices = @transform_2, window_bounds = array<i64: 8, 128>}]} {
    %c0 = arith.constant 0 : index
    %c0_0 = arith.constant 0 : index
    %0 = vector.load %arg1[%c0, %c0_0] : memref<9x128xf32, #tpu.memory_space<vmem>>, vector<8x128xf32>
    %c1 = arith.constant 1 : index
    %c0_1 = arith.constant 0 : index
    %1 = vector.load %arg1[%c1, %c0_1] : memref<9x128xf32, #tpu.memory_space<vmem>>, vector<8x128xf32>
    %c0_2 = arith.constant 0 : index
    %c0_3 = arith.constant 0 : index
    %2 = vector.load %arg2[%c0_2, %c0_3] : memref<8x128xf32, #tpu.memory_space<vmem>>, vector<8x128xf32>
    %3 = arith.maximumf %0, %2 : vector<8x128xf32>
    %4 = arith.maximumf %3, %1 : vector<8x128xf32>
    %c0_4 = arith.constant 0 : index
    %c0_5 = arith.constant 0 : index
    %5 = vector.load %arg3[%c0_4, %c0_5] : memref<8x128xf32, #tpu.memory_space<vmem>>, vector<8x128xf32>
    tpu.vector_store %arg3[%c0_4, %c0_5], %4 {strides = array<i32>} : memref<8x128xf32, #tpu.memory_space<vmem>>, vector<8x128xf32>,
    return
  }
  func.func @transform_0(%arg0: i32) -> (i32, i32) {
    %c0_i32 = arith.constant 0 : i32
    %c0_i32_0 = arith.constant 0 : i32
    return %c0_i32, %arg0 : i32, i32
  }
  func.func @transform_1(%arg0: i32) -> (i32, i32) {
    %c0_i32 = arith.constant 0 : i32
    %c0_i32_0 = arith.constant 0 : i32
    return %c0_i32, %arg0 : i32, i32
  }
  func.func @transform_2(%arg0: i32) -> (i32, i32) {
    %c0_i32 = arith.constant 0 : i32
    %c0_i32_0 = arith.constant 0 : i32
    return %c0_i32, %arg0 : i32, i32
  }
}

</mosaic_0001>

<bundles_post_ra>
// kernel: tpu_custom_call.1
= control target key start
LH: loop header
LB: loop body
LE: loop exit
PB: predicated region body
PF: predicated region fallthrough
CT: control target
= control target key end

     0   :  { %7 = vsyncpa [#allocation3], 0  ;;  %s193_s0 = inlined_call_operand.hbm [shape: f32[9,128], index: 0, kind: input, shape index: {}]   ;;  %s194_s1 = inlined_call_operand.hbm [shape: f32[8,128], index: 1, kind: input, shape index: {}]   ;;  %s195_s2 = inlined_call_operand.hbm [shape: f32[8,128], index: 2, kind: output, shape index: {}]  }
   0x1   :  { %8 = vsyncpa [#allocation6], 0 }
   0x2   :  { %9 = vsyncpa [#allocation4], 0  ;;  %s137_s9 = smov [#allocation2]   ;;  %s65_s13 = scalar_lea.hbm %s193_s0, 256 }
   0x3   :  { %s15_s10 = sshll.u32 %s137_s9, 4  ;;  %p66_p0 = scmp.ne.s32.totalorder %s193_s0, %s65_s13  ;;  %s16_s10 = int_to_ptr.vmem [resolvable:$true] %s15_s10 }
   0x4   :  { %p69_p1 = scmp.lt.u32.totalorder %s65_s13, %s193_s0 }
   0x6   :  { %p71_p2 = pnand %p69_p1, %p66_p0 }
   0x8   :  { %74 = shalt.err (!%p71_p2)
}
   0x9   :  { %s75_s18 = scalar_lea.vmem %s16_s10, 256  ;;  %p80_p4 = scmp.lt.s32.totalorder %s16_s10, %s16_s10 }
   0xa   :  { %p76_p3 = scmp.ne.s32.totalorder %s16_s10, %s75_s18  ;;  %p81_p5 = scmp.lt.s32.totalorder %s75_s18, %s75_s18 }
   0xc   :  { %p82_p6 = por %p81_p5, %p80_p4 }
   0xe   :  { %p83_p7 = pnand %p82_p6, %p76_p3 }
  0x10   :  { %86 = shalt.err (!%p83_p7)
}
  0x11   :  { %s138_s19 = smov 128   ;;  %s139_s20 = smov 8  }
  0x12   :  { %21 = dma.hbm_to_vmem [thread:$0]  %s193_s0, 256, %s16_s10, [#allocation3], %s138_s19, %s138_s19, %s139_s20  }
  0x13   :  { %s140_s23 = smov [#allocation5]   ;;  %s87_s27 = scalar_lea.hbm %s194_s1, 128 }
  0x14   :  { %s28_s24 = sshll.u32 %s140_s23, 4  ;;  %p88_p8 = scmp.ne.s32.totalorder %s194_s1, %s87_s27  ;;  %s29_s24 = int_to_ptr.vmem [resolvable:$true] %s28_s24 }
  0x15   :  { %p91_p9 = scmp.lt.u32.totalorder %s87_s27, %s194_s1 }
  0x17   :  { %p93_p10 = pnand %p91_p9, %p88_p8 }
  0x19   :  { %96 = shalt.err (!%p93_p10)
}
  0x1a   :  { %s97_s4 = scalar_lea.vmem %s29_s24, 128  ;;  %p102_p12 = scmp.lt.s32.totalorder %s29_s24, %s29_s24 }
  0x1b   :  { %p98_p11 = scmp.ne.s32.totalorder %s29_s24, %s97_s4  ;;  %p103_p13 = scmp.lt.s32.totalorder %s97_s4, %s97_s4 }
  0x1d   :  { %p104_p0 = por %p103_p13, %p102_p12 }
  0x1f   :  { %p105_p1 = pnand %p104_p0, %p98_p11 }
  0x21   :  { %108 = shalt.err (!%p105_p1)
}
  0x22   :  { %31 = dma.hbm_to_vmem [thread:$0]  %s194_s1, 128, %s29_s24, [#allocation6]  }
  0x23   :  { %131 = dma.done.wait [#allocation3], 256  }
  0x24   :  { %132 = vsyncadd [#allocation3], 4294967040 }
  0x25   :  { %133 = dma.done.wait [#allocation6], 128  }
  0x26   :  { %134 = vsyncadd [#allocation6], 4294967168  ;;  %v38_v0 = vld [vmem:[#allocation2] sm:$0xff]  ;;  %v40_v2 = vld [vmem:[#allocation5] sm:$0xff]  ;;  %s141_s6 = smov [#allocation7]  }
  0x27   :  { %v39_v1 = vld [vmem:[#allocation2 + $0x1] sm:$0xff]  ;;  %s50_s7 = sshll.u32 %s141_s6, 4  ;;  %v41_v3 = vmax.f32 %v38_v0, %v40_v2  ;;  %s51_s7 = int_to_ptr.vmem [resolvable:$true] %s50_s7 }
  0x28   :  { %s109_s8 = scalar_lea.vmem %s51_s7, 128  ;;  %p114_p3 = scmp.lt.s32.totalorder %s51_s7, %s51_s7 }
  0x29   :  { %v42_v4 = vmax.f32 %v41_v3, %v39_v1  ;;  %p110_p2 = scmp.ne.s32.totalorder %s51_s7, %s109_s8  ;;  %p115_p4 = scmp.lt.s32.totalorder %s109_s8, %s109_s8 }
  0x2b   :  { %43 = vst [vmem:[#allocation7] sm:$0xff] %v42_v4  ;;  %p116_p5 = por %p115_p4, %p114_p3 }
  0x2d   :  { %p117_p6 = pnand %p116_p5, %p110_p2 }
  0x2f   :  { %120 = shalt.err (!%p117_p6)
}
  0x30   :  { %s121_s10 = scalar_lea.hbm %s195_s2, 128 }
  0x31   :  { %p122_p7 = scmp.ne.s32.totalorder %s195_s2, %s121_s10  ;;  %p125_p8 = scmp.lt.u32.totalorder %s121_s10, %s195_s2 }
  0x33   :  { %p127_p9 = pnand %p125_p8, %p122_p7 }
  0x35   :  { %130 = shalt.err (!%p127_p9)
}
  0x36   :  { %53 = dma.vmem_to_hbm [thread:$0]  %s51_s7, 128, %s195_s2, [#allocation4]  }
  0x37   :  { %135 = dma.done.wait [#allocation4], 128  }
  0x38   :  { %136 = vsyncadd [#allocation4], 4294967168 }
  0x39   :  { %57 = vsyncpa [#allocation3], 1 }
  0x3a   :  { %58 = vsyncpa [#allocation6], 1 }
  0x3b   :  { %59 = vsyncpa [#allocation4], 1 }

</bundles_post_ra>
